<compile_context>
chip_gen: v5e
topology: v5e:2x2
jax: 0.10.0
libtpu: 0.0.40
codegen_flags: <defaults>
</compile_context>

<pallas_src>
import jax
import jax.numpy as jnp
from jax.experimental import pallas as pl
from jax.experimental.pallas import tpu as pltpu

IN_FEATURES = 128
NUM_CLASSES = 2


def _round_up(n: int, m: int) -> int:
    return ((n + m - 1) // m) * m


def _make_lossv_kernel(n_valid: int, tile_n: int):
    """Build the kernel with the true batch size / tile size baked in."""

    def kernel(x_ref, dw_ref, db_ref, sign_ref, out_ref):
        # x_ref:    (tile_n, 128) native float dtype (pipelined HBM stream)
        # dw_ref:   (1, 128) f32  = W[1] - W[0]   (VMEM resident)
        # db_ref:   (1, 1)   f32  = b[1] - b[0]   (VMEM resident)
        # sign_ref: (tile_n, 1) f32  = 1 - 2*label (tiny side stream)
        # out_ref:  (1, 1) f32    resident accumulator -> final mean loss
        step = pl.program_id(0)

        @pl.when(step == 0)
        def _init():
            out_ref[...] = jnp.zeros_like(out_ref)

        # Cast AFTER the DMA so HBM traffic stays in the input's native dtype.
        xf = x_ref[...].astype(jnp.float32)                     # (tile_n, 128)
        dw = dw_ref[...]                                         # (1, 128)

        # Binary-class logit margin d = z1 - z0:
        # VPU multiply + XLU lane reduce; MXU is irrelevant here.
        d = jnp.sum(xf * dw, axis=-1, keepdims=True) + db_ref[...]   # (tile_n, 1)

        # 2-class cross entropy: NLL = softplus(sign * d), numerically stable.
        t = sign_ref[...] * d
        nll = jnp.maximum(t, 0.0) + jnp.log(1.0 + jnp.exp(-jnp.abs(t)))

        # Mask out padded rows of the (possibly partial) last tile so the
        # final mean divides by the true N only.  A select (not a multiply)
        # is used so garbage/NaN padding cannot propagate.
        row = step * tile_n + jax.lax.broadcasted_iota(
            jnp.int32, (tile_n, 1), 0
        )
        nll = jnp.where(row < n_valid, nll, 0.0)

        out_ref[...] += jnp.sum(nll)

        @pl.when(step == pl.num_programs(0) - 1)
        def _finalize():
            out_ref[...] = out_ref[...] / jnp.float32(n_valid)

    return kernel


def lossv_forward(x, labels, weight, bias, *, tile_n=2048):
    """Mean cross-entropy of Linear(128, 2)(x.squeeze(1)) vs labels.

    x:      (N, 1, 128) float array, kept in its native dtype (bf16 welcome)
    labels: (N,) integer class ids in {0, 1}
    weight: (2, 128) torch nn.Linear weight; bias: (2,)
    """
    x2d = jnp.squeeze(x, axis=1)                                  # (N, 128), native dtype
    n = x2d.shape[0]
    assert x2d.shape[1] == IN_FEATURES

    # 2-class reformulation: only the margin weight/bias are needed.
    w = weight.astype(jnp.float32)
    dw = (w[1] - w[0]).reshape(1, IN_FEATURES)                    # (1, 128) f32
    db = (bias[1] - bias[0]).astype(jnp.float32).reshape(1, 1)    # (1, 1)   f32
    # sign = +1 for label 0, -1 for label 1 (so NLL = softplus(sign * margin)).
    sign = (1.0 - 2.0 * labels.astype(jnp.float32)).reshape(n, 1)  # (N, 1) f32

    # Tile the batch dim; keep tiles a multiple of 8 sublanes and well under
    # VMEM (2048 * 128 * 4B = 1 MiB per f32 buffer, x2 for double buffering).
    tile = max(8, min(tile_n, _round_up(n, 8)))
    grid = (pl.cdiv(n, tile),)

    out = pl.pallas_call(
        _make_lossv_kernel(n, tile),
        out_shape=jax.ShapeDtypeStruct((1, 1), jnp.float32),
        grid=grid,
        in_specs=[
            # x: the only large pipelined HBM stream.
            pl.BlockSpec((tile, IN_FEATURES), lambda i: (i, 0)),
            # margin weight: constant index_map -> loaded once, VMEM resident.
            pl.BlockSpec((1, IN_FEATURES), lambda i: (0, 0)),
            # margin bias: constant index_map -> loaded once, VMEM resident.
            pl.BlockSpec((1, 1), lambda i: (0, 0)),
            # per-row sign: tiny f32 side stream.
            pl.BlockSpec((tile, 1), lambda i: (i, 0)),
        ],
        # Constant output block index -> resident accumulator across the grid.
        out_specs=pl.BlockSpec((1, 1), lambda i: (0, 0)),
        compiler_params=pltpu.CompilerParams(
            dimension_semantics=("arbitrary",),
        ),
    )(x2d, dw, db, sign)
    return out[0, 0]


def _reference_loss(x, labels, weight, bias):
    """Plain-JAX reference matching torch semantics."""
    x2d = jnp.squeeze(x, axis=1).astype(jnp.float32)
    logits = x2d @ weight.T + bias
    logp = jax.nn.log_softmax(logits, axis=-1)
    nll = -jnp.take_along_axis(logp, labels.reshape(-1, 1), axis=-1)
    return jnp.mean(nll)


if __name__ == "__main__":
    key = jax.random.PRNGKey(0)
    k_x, k_lab, k_w, k_b = jax.random.split(key, 4)

    # Deliberately NOT a multiple of the tile so the partial-tile masking and
    # the multi-step accumulation path are both exercised.
    N = 300
    x = jax.random.normal(k_x, (N, 1, IN_FEATURES), dtype=jnp.float32)
    labels = jax.random.randint(k_lab, (N,), 0, NUM_CLASSES, dtype=jnp.int32)

    # Deterministic nn.Linear(128, 2)-style init: U(-1/sqrt(128), 1/sqrt(128)).
    bound = 1.0 / (IN_FEATURES ** 0.5)
    weight = jax.random.uniform(
        k_w, (NUM_CLASSES, IN_FEATURES), minval=-bound, maxval=bound, dtype=jnp.float32
    )
    bias = jax.random.uniform(
        k_b, (NUM_CLASSES,), minval=-bound, maxval=bound, dtype=jnp.float32
    )

    # f32 path, small tile -> grid of 3 steps (2 full tiles + 1 masked remainder).
    loss = lossv_forward(x, labels, weight, bias, tile_n=128)
    jax.block_until_ready(loss)
    ref = _reference_loss(x, labels, weight, bias)
    assert jnp.allclose(loss, ref, rtol=1e-5, atol=1e-5), (loss, ref)

    # bf16 activations: native-dtype path (halves HBM traffic for x).
    xb = x.astype(jnp.bfloat16)
    loss_b = lossv_forward(xb, labels, weight, bias, tile_n=128)
    jax.block_until_ready(loss_b)
    ref_b = _reference_loss(xb, labels, weight, bias)
    assert jnp.allclose(loss_b, ref_b, rtol=1e-4, atol=1e-4), (loss_b, ref_b)

    print("KERNEL_OK")
</pallas_src>

<mosaic_0001>
module attributes {stable_mosaic.version = 11 : i64} {
  func.func @kernel(%arg0: i32, %arg1: memref<128x128xf32, #tpu.memory_space<vmem>>, %arg2: memref<1x128xf32, #tpu.memory_space<vmem>>, %arg3: memref<1x1xf32, #tpu.memory_space<vmem>>, %arg4: memref<128x1xf32, #tpu.memory_space<vmem>>, %arg5: memref<1x1xf32, #tpu.memory_space<vmem>>) attributes {dimension_semantics = [#tpu.dimension_semantics<arbitrary>], iteration_bounds = array<i64: 3>, scalar_prefetch = 0 : i64, scratch_operands = 0 : i64, tpu.core_type = #tpu.core_type<tc>, window_params = [{transform_indices = @transform_0, window_bounds = array<i64: 128, 128>}, {pipeline_mode = #tpu.pipeline_mode<synchronous>, transform_indices = @transform_1, window_bounds = array<i64: 1, 128>}, {pipeline_mode = #tpu.pipeline_mode<synchronous>, transform_indices = @transform_2, window_bounds = array<i64: 1, 1>}, {transform_indices = @transform_3, window_bounds = array<i64: 128, 1>}, {pipeline_mode = #tpu.pipeline_mode<synchronous>, transform_indices = @transform_4, window_bounds = array<i64: 1, 1>}]} {
    %c0_i32 = arith.constant 0 : i32
    %0 = arith.cmpi eq, %arg0, %c0_i32 : i32
    %1 = arith.extui %0 : i1 to i32
    %c0_i32_0 = arith.constant 0 : i32
    %2 = arith.cmpi ne, %1, %c0_i32_0 : i32
    scf.if %2 {
      %cst_18 = arith.constant 0.000000e+00 : f32
      %43 = vector.broadcast %cst_18 : f32 to vector<1x1xf32>
      %c0_19 = arith.constant 0 : index
      %c0_20 = arith.constant 0 : index
      %44 = vector.load %arg5[%c0_19, %c0_20] : memref<1x1xf32, #tpu.memory_space<vmem>>, vector<1x1xf32>
      tpu.vector_store %arg5[%c0_19, %c0_20], %43 {strides = array<i32>} : memref<1x1xf32, #tpu.memory_space<vmem>>, vector<1x1xf32>,
    } else {
    }
    %c0 = arith.constant 0 : index
    %c0_1 = arith.constant 0 : index
    %3 = vector.load %arg1[%c0, %c0_1] : memref<128x128xf32, #tpu.memory_space<vmem>>, vector<128x128xf32>
    %c0_2 = arith.constant 0 : index
    %c0_3 = arith.constant 0 : index
    %4 = vector.load %arg2[%c0_2, %c0_3] : memref<1x128xf32, #tpu.memory_space<vmem>>, vector<1x128xf32>
    %5 = vector.broadcast %4 : vector<1x128xf32> to vector<128x128xf32>
    %6 = arith.mulf %3, %5 : vector<128x128xf32>
    %cst = arith.constant dense<0.000000e+00> : vector<128xf32>
    %7 = vector.multi_reduction <add>, %6, %cst [1] : vector<128x128xf32> to vector<128xf32>
    %8 = vector.shape_cast %7 : vector<128xf32> to vector<128x1xf32>
    %c0_4 = arith.constant 0 : index
    %c0_5 = arith.constant 0 : index
    %9 = vector.load %arg3[%c0_4, %c0_5] : memref<1x1xf32, #tpu.memory_space<vmem>>, vector<1x1xf32>
    %10 = vector.broadcast %9 : vector<1x1xf32> to vector<128x1xf32>
    %11 = arith.addf %8, %10 : vector<128x1xf32>
    %c0_6 = arith.constant 0 : index
    %c0_7 = arith.constant 0 : index
    %12 = vector.load %arg4[%c0_6, %c0_7] : memref<128x1xf32, #tpu.memory_space<vmem>>, vector<128x1xf32>
    %13 = arith.mulf %12, %11 : vector<128x1xf32>
    %cst_8 = arith.constant 0.000000e+00 : f32
    %14 = vector.broadcast %cst_8 : f32 to vector<128x1xf32>
    %15 = arith.maximumf %13, %14 : vector<128x1xf32>
    %16 = math.absf %13 : vector<128x1xf32>
    %cst_9 = arith.constant 0.000000e+00 : f32
    %17 = vector.broadcast %cst_9 : f32 to vector<128x1xf32>
    %18 = arith.subf %17, %16 : vector<128x1xf32>
    %19 = math.exp %18 : vector<128x1xf32>
    %cst_10 = arith.constant 1.000000e+00 : f32
    %20 = vector.broadcast %cst_10 : f32 to vector<128x1xf32>
    %21 = arith.addf %20, %19 : vector<128x1xf32>
    %22 = math.log %21 : vector<128x1xf32>
    %23 = arith.addf %15, %22 : vector<128x1xf32>
    %c128_i32 = arith.constant 128 : i32
    %24 = arith.muli %arg0, %c128_i32 : i32
    %25 = tpu.iota {dimensions = array<i32: 0>} : vector<128x1xi32>
    %26 = vector.broadcast %24 : i32 to vector<128x1xi32>
    %27 = arith.addi %26, %25 : vector<128x1xi32>
    %c300_i32 = arith.constant 300 : i32
    %28 = vector.broadcast %c300_i32 : i32 to vector<128x1xi32>
    %29 = arith.cmpi slt, %27, %28 : vector<128x1xi32>
    %cst_11 = arith.constant 0.000000e+00 : f32
    %30 = vector.broadcast %cst_11 : f32 to vector<128x1xf32>
    %31 = arith.select %29, %23, %30 : vector<128x1xi1>, vector<128x1xf32>
    %c0_12 = arith.constant 0 : index
    %c0_13 = arith.constant 0 : index
    %32 = vector.load %arg5[%c0_12, %c0_13] : memref<1x1xf32, #tpu.memory_space<vmem>>, vector<1x1xf32>
    %33 = vector.shape_cast %31 : vector<128x1xf32> to vector<1x128x1xf32>
    %cst_14 = arith.constant dense<0.000000e+00> : vector<1xf32>
    %34 = vector.multi_reduction <add>, %33, %cst_14 [1, 2] : vector<1x128x1xf32> to vector<1xf32>
    %35 = vector.shape_cast %34 : vector<1xf32> to vector<1x1x1xf32>
    %36 = vector.extract %35[0, 0, 0] : f32 from vector<1x1x1xf32>
    %37 = vector.broadcast %36 : f32 to vector<1x1xf32>
    %38 = arith.addf %32, %37 : vector<1x1xf32>
    %c0_15 = arith.constant 0 : index
    %c0_16 = arith.constant 0 : index
    %39 = vector.load %arg5[%c0_15, %c0_16] : memref<1x1xf32, #tpu.memory_space<vmem>>, vector<1x1xf32>
    tpu.vector_store %arg5[%c0_15, %c0_16], %38 {strides = array<i32>} : memref<1x1xf32, #tpu.memory_space<vmem>>, vector<1x1xf32>,
    %c2_i32 = arith.constant 2 : i32
    %40 = arith.cmpi eq, %arg0, %c2_i32 : i32
    %41 = arith.extui %40 : i1 to i32
    %c0_i32_17 = arith.constant 0 : i32
    %42 = arith.cmpi ne, %41, %c0_i32_17 : i32
    scf.if %42 {
      %c0_18 = arith.constant 0 : index
      %c0_19 = arith.constant 0 : index
      %43 = vector.load %arg5[%c0_18, %c0_19] : memref<1x1xf32, #tpu.memory_space<vmem>>, vector<1x1xf32>
      %cst_20 = arith.constant 3.000000e+02 : f32
      %44 = vector.broadcast %cst_20 : f32 to vector<1x1xf32>
      %45 = arith.divf %43, %44 : vector<1x1xf32>
      %c0_21 = arith.constant 0 : index
      %c0_22 = arith.constant 0 : index
      %46 = vector.load %arg5[%c0_21, %c0_22] : memref<1x1xf32, #tpu.memory_space<vmem>>, vector<1x1xf32>
      tpu.vector_store %arg5[%c0_21, %c0_22], %45 {strides = array<i32>} : memref<1x1xf32, #tpu.memory_space<vmem>>, vector<1x1xf32>,
    } else {
    }
    return
  }
  func.func @transform_0(%arg0: i32) -> (i32, i32) {
    %c0_i32 = arith.constant 0 : i32
    %c0_i32_0 = arith.constant 0 : i32
    return %arg0, %c0_i32 : i32, i32
  }
  func.func @transform_1(%arg0: i32) -> (i32, i32) {
    %c0_i32 = arith.constant 0 : i32
    %c0_i32_0 = arith.constant 0 : i32
    %c0_i32_1 = arith.constant 0 : i32
    return %c0_i32, %c0_i32_0 : i32, i32
  }
  func.func @transform_2(%arg0: i32) -> (i32, i32) {
    %c0_i32 = arith.constant 0 : i32
    %c0_i32_0 = arith.constant 0 : i32
    %c0_i32_1 = arith.constant 0 : i32
    return %c0_i32, %c0_i32_0 : i32, i32
  }
  func.func @transform_3(%arg0: i32) -> (i32, i32) {
    %c0_i32 = arith.constant 0 : i32
    %c0_i32_0 = arith.constant 0 : i32
    return %arg0, %c0_i32 : i32, i32
  }
  func.func @transform_4(%arg0: i32) -> (i32, i32) {
    %c0_i32 = arith.constant 0 : i32
    %c0_i32_0 = arith.constant 0 : i32
    %c0_i32_1 = arith.constant 0 : i32
    return %c0_i32, %c0_i32_0 : i32, i32
  }
}

</mosaic_0001>

<bundles_post_ra>
// kernel: tpu_custom_call.1
= control target key start
LH: loop header
LB: loop body
LE: loop exit
PB: predicated region body
PF: predicated region fallthrough
CT: control target
= control target key end

     0   :  { %s1117_s0 = inlined_call_operand.vmem [shape: f32[300,128], index: 0, kind: input, shape index: {}]   ;;  %s1118_s1 = inlined_call_operand.vmem [shape: f32[1,128], index: 1, kind: input, shape index: {}]   ;;  %s1119_s2 = inlined_call_operand.<no memory space> [shape: f32[1,1], index: 2, kind: input, shape index: {}]   ;;  %s1120_s3 = inlined_call_operand.vmem [shape: f32[300,1], index: 3, kind: input, shape index: {}]   ;;  %s1121_s4 = inlined_call_operand.hbm [shape: f32[1,1], index: 4, kind: output, shape index: {}]  }
   0x1   :  { %v9_v0 = vstv %s1119_s2 }
   0x2   :  { %10 = vst [vmem:[#allocation2] sm:$0x1] %v9_v0 }
   0x3   :  { %11 = vsyncpa [#allocation4], 0  ;;  %s880_s17 = smov 0  }
   0x4 LB: > { %s886_s18 = sadd.s32 4294967295, %s847_s17   ;;  %p710_p0 = scmp.ge.s32.totalorder %s847_s17, 1  ;;  %s847_s17 = sphi %s880_s17, %s17_s17  }
   0x5   : > { %p188_p1 = scmp.lt.s32.totalorder %s847_s17, 4 }
   0x7   : > { %p189_p2 = pnand %p710_p0, %p188_p1 }
   0x8   : > { %s711_s2 = sshll.u32 (!%p189_p2), %s886_s18, 4  ;;  %p715_p4 = scmp.ne.s32.totalorder (!%p189_p2), %s886_s18, 0 }
   0x9   : > { %192 = sbr.rel (%p189_p2) target bundleno = 434 (0x1b2), region = 36  ;;  %p227_p3 = scmp.lt.s32.totalorder (!%p189_p2), %s711_s2, 37 }
   0xe   : > { %s1123_s2 = smov (!%p227_p3, %s711_s2), 37  ;;  %253 = sbr.rel (%p715_p4) target bundleno = 21 (0x15), region = 40 }
   0xf   : > { %s712_s19 = sshll.u32 %s1123_s2, 3 }
  0x10   : > { %s894_s22 = scalar_lea.vmem %s1117_s0, %s712_s19  ;;  %s899_s25 = scalar_lea.vmem %s1120_s3, %s712_s19 }
  0x13   : > { %vm254_vm0 = vcmask 0   ;;  %v849_v1 = vmov 0.0  }
  0x14   : > { %255 = vst.msk [vmem:[#allocation3] sm:$0x1] %vm254_vm0, %v849_v1 }
  0x15 PF: > { %v260_v2 = vld [vmem:[%s894_s22 + $0x20] sm:$0xff]  ;;  %v258_v4 = vld [vmem:[%s894_s22 + $0x10] sm:$0xff]  ;;  %v261_v9 = vld [vmem:[%s894_s22 + $0x28] sm:$0xff]  ;;  %s716_s28 = sshll.u32 %s886_s18, 7  ;;  %vm588_vm4 = vcmask 7168   ;;  %p717_p5 = scmp.ne.s32.totalorder %s886_s18, 2 }
  0x16   : > { %v741_v3 = vld [vmem:[%s1118_s1] ss:$0 sm:$0xff]  ;;  %v259_v10 = vld [vmem:[%s894_s22 + $0x18] sm:$0xff]  ;;  %v257_v11 = vld [vmem:[%s894_s22 + $0x8] sm:$0xff] }
  0x17   : > { %v256_v5 = vld [vmem:[%s894_s22] sm:$0xff]  ;;  %v280_v6 = vmul.f32 %v741_v3, %v260_v2  ;;  %v278_v7 = vmul.f32 %v741_v3, %v258_v4  ;;  %v281_v12 = vmul.f32 %v741_v3, %v261_v9  ;;  %v279_v13 = vmul.f32 %v741_v3, %v259_v10  ;;  %v263_v16 = vld [vmem:[%s894_s22 + $0x38] sm:$0xff]  ;;  %v262_v17 = vld [vmem:[%s894_s22 + $0x30] sm:$0xff] }
  0x18   : > { %v276_v8 = vmul.f32 %v741_v3, %v256_v5  ;;  %v277_v14 = vmul.f32 %v741_v3, %v257_v11  ;;  %v264_v15 = vld [vmem:[%s894_s22 + $0x40] sm:$0xff]  ;;  %v283_v19 = vmul.f32 %v741_v3, %v263_v16  ;;  %v282_v20 = vmul.f32 %v741_v3, %v262_v17  ;;  %v267_v21 = vld [vmem:[%s894_s22 + $0x58] sm:$0xff]  ;;  %v266_v22 = vld [vmem:[%s894_s22 + $0x50] sm:$0xff] }
  0x19   : > { %300 = vadd.xlane.f32.xlu2 %v280_v6  ;;  %296 = vadd.xlane.f32.xlu1 %v278_v7  ;;  %v284_v18 = vmul.f32 %v741_v3, %v264_v15  ;;  %v265_v23 = vld [vmem:[%s894_s22 + $0x48] sm:$0xff]  ;;  %v287_v24 = vmul.f32 %v741_v3, %v267_v21  ;;  %v286_v25 = vmul.f32 %v741_v3, %v266_v22  ;;  %v270_v27 = vld [vmem:[%s894_s22 + $0x70] sm:$0xff]  ;;  %v268_v29 = vld [vmem:[%s894_s22 + $0x60] sm:$0xff] }
  0x1a   : > { %292 = vadd.xlane.f32.xlu0 %v276_v8  ;;  %v285_v26 = vmul.f32 %v741_v3, %v265_v23  ;;  %v269_v28 = vld [vmem:[%s894_s22 + $0x68] sm:$0xff]  ;;  %v290_v30 = vmul.f32 %v741_v3, %v270_v27  ;;  %v288_v32 = vmul.f32 %v741_v3, %v268_v29  ;;  %v271_v33 = vld [vmem:[%s894_s22 + $0x78] sm:$0xff]  ;;  %v921_v35 = vld [vmem:[#allocation2] ss:$0 sm:$0xff]  ;;  %v521_v8 = vlaneseq }
  0x1b   : > { %v289_v31 = vmul.f32 %v741_v3, %v269_v28  ;;  %v291_v34 = vmul.f32 %v741_v3, %v271_v33  ;;  %v348_v36 = vld [vmem:[%s899_s25 + $0x20] sm:$0xff]  ;;  %v346_v38 = vld [vmem:[%s899_s25 + $0x10] sm:$0xff]  ;;  %v349_v54 = vld [vmem:[%s899_s25 + $0x28] sm:$0xff] }
  0x1c   : > { %v344_v42 = vld [vmem:[%s899_s25] sm:$0xff]  ;;  %v347_v56 = vld [vmem:[%s899_s25 + $0x18] sm:$0xff]  ;;  %v345_v61 = vld [vmem:[%s899_s25 + $0x8] sm:$0xff]  ;;  %v957_v22 = vshrl.u32 %v521_v8, 7 }
  0x1d   : > { %v351_v17 = vld [vmem:[%s899_s25 + $0x38] sm:$0xff] }
  0x21   : > { %302 = vadd.xlane.f32.xlu2 %v281_v12  ;;  %298 = vadd.xlane.f32.xlu1 %v279_v13  ;;  %v352_v12 = vld [vmem:[%s899_s25 + $0x40] sm:$0xff] }
  0x22   : > { %294 = vadd.xlane.f32.xlu0 %v277_v14 }
  0x29   : > { %308 = vadd.xlane.f32.xlu2 %v284_v18  ;;  %306 = vadd.xlane.f32.xlu1 %v283_v19 }
  0x2a   : > { %304 = vadd.xlane.f32.xlu0 %v282_v20 }
  0x31   : > { %314 = vadd.xlane.f32.xlu2 %v287_v24  ;;  %312 = vadd.xlane.f32.xlu1 %v286_v25 }
  0x32   : > { %310 = vadd.xlane.f32.xlu0 %v285_v26 }
  0x39   : > { %320 = vadd.xlane.f32.xlu2 %v290_v30  ;;  %318 = vadd.xlane.f32.xlu1 %v289_v31  ;;  %v350_v31 = vld [vmem:[%s899_s25 + $0x30] sm:$0xff] }
  0x3a   : > { %316 = vadd.xlane.f32.xlu0 %v288_v32 }
  0x42   : > { %322 = vadd.xlane.f32.xlu0 %v291_v34  ;;  %v968_v34 = vstv %s716_s28 }
  0x8c   : > { %v301_v37 = vpop.xlane.xlu2 %300  ;;  %v297_v39 = vpop.xlane.xlu1 %296 }
  0x8d   : > { %v332_v40 = vadd.f32 %v921_v35, %v301_v37  ;;  %v330_v41 = vadd.f32 %v921_v35, %v297_v39  ;;  %v293_v43 = vpop.xlane.xlu0 %292 }
  0x8e   : > { %v328_v44 = vadd.f32 %v921_v35, %v293_v43  ;;  %v526_v43 = vadd.s32 32, %v957_v22 }
  0x8f   : > { %v929_v45 = vmul.f32 %v348_v36, %v332_v40  ;;  %v931_v46 = vmul.f32 %v346_v38, %v330_v41  ;;  %v524_v36 = vadd.s32 16, %v957_v22  ;;  %v355_v41 = vld [vmem:[%s899_s25 + $0x58] sm:$0xff] }
  0x90   : > { %v933_v47 = vmul.f32 %v344_v42, %v328_v44  ;;  %v523_v44 = vadd.s32 8, %v957_v22 }
  0x91   : > { %v396_v48 = vand.u32 2147483647, %v929_v45  ;;  %v394_v49 = vand.u32 2147483647, %v931_v46 }
  0x92   : > { %v392_v50 = vand.u32 2147483647, %v933_v47 }
  0x93   : > { %v412_v51 = vsub.f32 0.0, %v396_v48  ;;  %v410_v52 = vsub.f32 0.0, %v394_v49  ;;  %v525_v49 = vadd.s32 24, %v957_v22 }
  0x94   : > { %v408_v53 = vsub.f32 0.0, %v392_v50  ;;  %v303_v55 = vpop.xlane.xlu2 %302  ;;  %v299_v57 = vpop.xlane.xlu1 %298 }
  0x95   : > { %v428_v58 = vmul.f32 1.442695, %v410_v52  ;;  %v333_v59 = vadd.f32 %v921_v35, %v303_v55  ;;  %v331_v60 = vadd.f32 %v921_v35, %v299_v57  ;;  %v295_v62 = vpop.xlane.xlu0 %294  ;;  %v432_v1 = vmul.f32 1.442695, %v412_v51 }
  0x96   : > { %v424_v63 = vmul.f32 1.442695, %v408_v53  ;;  %v329_v0 = vadd.f32 %v921_v35, %v295_v62  ;;  %v980_v53 = vadd.s32 %v968_v34, %v524_v36  ;;  %v988_v62 = vadd.s32 %v968_v34, %v526_v43 }
  0x97   : > { %v944_v2 = vmul.f32 %v349_v54, %v333_v59  ;;  %v946_v3 = vmul.f32 %v347_v56, %v331_v60  ;;  %743 = vpow2.f32 %v428_v58  ;;  %v539_v58 = vadd.s32 %v968_v34, %v957_v22 }
  0x98   : > { %v948_v4 = vmul.f32 %v345_v61, %v329_v0  ;;  %745 = vpow2.f32 %v424_v63  ;;  %v527_v59 = vadd.s32 40, %v957_v22  ;;  %v991_v63 = vadd.s32 %v968_v34, %v523_v44 }
  0x99   : > { %v397_v5 = vand.u32 2147483647, %v944_v2  ;;  %v395_v6 = vand.u32 2147483647, %v946_v3  ;;  %747 = vpow2.f32 %v432_v1  ;;  %vm557_vm1 = vcmp.lt.s32.totalorder %v980_v53, 300 }
  0x9a   : > { %v393_v7 = vand.u32 2147483647, %v948_v4  ;;  %vm555_vm2 = vcmp.lt.s32.totalorder %v539_v58, 300  ;;  %vm556_vm3 = vcmp.lt.s32.totalorder %v991_v63, 300  ;;  %vm559_vm6 = vcmp.lt.s32.totalorder %v988_v62, 300 }
  0x9b   : > { %v413_v9 = vsub.f32 0.0, %v397_v5  ;;  %v411_v10 = vsub.f32 0.0, %v395_v6  ;;  %v994_v6 = vadd.s32 %v968_v34, %v525_v49  ;;  %v1019_v36 = vadd.s32 64, %v957_v22 }
  0x9c   : > { %v409_v11 = vsub.f32 0.0, %v393_v7  ;;  %v309_v13 = vpop.xlane.xlu2 %308  ;;  %v307_v14 = vpop.xlane.xlu1 %306 }
  0x9d   : > { %v434_v15 = vmul.f32 1.442695, %v413_v9  ;;  %v336_v16 = vadd.f32 %v921_v35, %v309_v13  ;;  %v305_v18 = vpop.xlane.xlu0 %304  ;;  %v744_v19 = vpop.eup %743  ;;  %v335_v20 = vadd.f32 %v921_v35, %v307_v14  ;;  %v430_v23 = vmul.f32 1.442695, %v411_v10 }
  0x9e   : > { %v746_v21 = vpop.eup %745  ;;  %v426_v26 = vmul.f32 1.442695, %v409_v11  ;;  %v458_v29 = vadd.f32 1.0, %v744_v19  ;;  %v334_v33 = vadd.f32 %v921_v35, %v305_v18  ;;  %v380_v13 = vmax.f32 %v929_v45, 0.0 }
  0x9f   : > { %v959_v24 = vmul.f32 %v352_v12, %v336_v16  ;;  %v456_v25 = vadd.f32 1.0, %v746_v21  ;;  %v962_v27 = vmul.f32 %v351_v17, %v335_v20  ;;  %v748_v28 = vpop.eup %747  ;;  %749 = vpow2.f32 %v434_v15  ;;  %v354_v17 = vld [vmem:[%s899_s25 + $0x50] sm:$0xff] }
  0xa0   : > { %v460_v38 = vadd.f32 1.0, %v748_v28  ;;  %v971_v40 = vmul.f32 %v350_v31, %v334_v33  ;;  %v1000_v14 = vadd.s32 %v968_v34, %v527_v59  ;;  %v378_v15 = vmax.f32 %v931_v46, 0.0  ;;  %v358_v28 = vld [vmem:[%s899_s25 + $0x70] sm:$0xff] }
  0xa1   : > { %v400_v30 = vand.u32 2147483647, %v959_v24  ;;  %751 = vlog2.f32 %v456_v25  ;;  %v399_v32 = vand.u32 2147483647, %v962_v27  ;;  %v376_v16 = vmax.f32 %v933_v47, 0.0 }
  0xa2   : > { %753 = vpow2.f32 %v430_v23  ;;  %v398_v51 = vand.u32 2147483647, %v971_v40  ;;  %v381_v20 = vmax.f32 %v944_v2, 0.0  ;;  %v353_v23 = vld [vmem:[%s899_s25 + $0x48] sm:$0xff]  ;;  %vm558_vm5 = vcmp.lt.s32.totalorder %v994_v6, 300 }
  0xa3   : > { %v416_v37 = vsub.f32 0.0, %v400_v30  ;;  %755 = vpow2.f32 %v426_v26  ;;  %v415_v39 = vsub.f32 0.0, %v399_v32  ;;  %v377_v30 = vmax.f32 %v948_v4, 0.0 }
  0xa4   : > { %v315_v42 = vpop.xlane.xlu2 %314  ;;  %757 = vlog2.f32 %v458_v29  ;;  %v414_v60 = vsub.f32 0.0, %v398_v51  ;;  %v313_v0 = vpop.xlane.xlu1 %312  ;;  %v379_v29 = vmax.f32 %v946_v3, 0.0  ;;  %v528_v3 = vadd.s32 48, %v957_v22 }
  0xa5   : > { %v339_v48 = vadd.f32 %v921_v35, %v315_v42  ;;  %v438_v50 = vmul.f32 1.442695, %v415_v39  ;;  %v750_v52 = vpop.eup %749  ;;  %v440_v54 = vmul.f32 1.442695, %v416_v37  ;;  %v311_v56 = vpop.xlane.xlu0 %310  ;;  %759 = vlog2.f32 %v460_v38 }
  0xa6   : > { %v461_v5 = vadd.f32 1.0, %v750_v52  ;;  %v436_v8 = vmul.f32 1.442695, %v414_v60  ;;  %v338_v21 = vadd.f32 %v921_v35, %v313_v0  ;;  %v337_v47 = vadd.f32 %v921_v35, %v311_v56 }
  0xa7   : > { %v982_v55 = vmul.f32 %v355_v41, %v339_v48  ;;  %v752_v57 = vpop.eup %751  ;;  %761 = vpow2.f32 %v438_v50  ;;  %v529_v37 = vadd.s32 56, %v957_v22  ;;  %vm560_vm7 = vcmp.lt.s32.totalorder %v1000_v14, 300 }
  0xa8   : > { %v754_v61 = vpop.eup %753  ;;  %v473_v10 = vmul.f32 0.6931472, %v752_v57  ;;  %763 = vpow2.f32 %v440_v54  ;;  %v1015_v31 = vmul.f32 %v354_v17, %v338_v21  ;;  %v1022_v39 = vmul.f32 %v353_v23, %v337_v47 }
  0xa9   : > { %v756_v1 = vpop.eup %755  ;;  %v459_v7 = vadd.f32 1.0, %v754_v61  ;;  %v403_v12 = vand.u32 2147483647, %v982_v55  ;;  %v545_v47 = vadd.s32 %v968_v34, %v528_v3  ;;  %v382_v62 = vmax.f32 %v971_v40, 0.0 }
  0xaa   : > { %v758_v9 = vpop.eup %757  ;;  %v457_v11 = vadd.f32 1.0, %v756_v1  ;;  %v504_v26 = vadd.f32 %v473_v10, %v376_v16  ;;  %v402_v4 = vand.u32 2147483647, %v1015_v31  ;;  %v401_v61 = vand.u32 2147483647, %v1022_v39  ;;  %v357_v16 = vld [vmem:[%s899_s25 + $0x68] sm:$0xff] }
  0xab   : > { %765 = vlog2.f32 %v459_v7  ;;  %v760_v19 = vpop.eup %759  ;;  %v477_v45 = vmul.f32 0.6931472, %v758_v9  ;;  %v419_v46 = vsub.f32 0.0, %v403_v12  ;;  %vm561_vm8 = vcmp.lt.s32.totalorder %v545_v47, 300 }
  0xac   : > { %767 = vlog2.f32 %v457_v11  ;;  %v321_v18 = vpop.xlane.xlu2 %320  ;;  %v481_v43 = vmul.f32 0.6931472, %v760_v19  ;;  %v571_v50 = vsel %vm555_vm2, %v504_v26, 0.0  ;;  %v319_v54 = vpop.xlane.xlu1 %318  ;;  %v418_v60 = vsub.f32 0.0, %v402_v4 }
  0xad   : > { %769 = vpow2.f32 %v436_v8  ;;  %v762_v25 = vpop.eup %761  ;;  %v342_v32 = vadd.f32 %v921_v35, %v321_v18  ;;  %v317_v41 = vpop.xlane.xlu0 %316  ;;  %v506_v49 = vadd.f32 %v477_v45, %v378_v15  ;;  %v446_v52 = vmul.f32 1.442695, %v419_v46 }
  0xae   : > { %771 = vlog2.f32 %v461_v5  ;;  %v764_v33 = vpop.eup %763  ;;  %v463_v38 = vadd.f32 1.0, %v762_v25  ;;  %v444_v8 = vmul.f32 1.442695, %v418_v60  ;;  %v417_v9 = vsub.f32 0.0, %v401_v61 }
  0xaf   : > { %v1026_v44 = vmul.f32 %v358_v28, %v342_v32  ;;  %v464_v59 = vadd.f32 1.0, %v764_v33  ;;  %v341_v10 = vadd.f32 %v921_v35, %v319_v54  ;;  %v508_v11 = vadd.f32 %v481_v43, %v380_v13  ;;  %v356_v33 = vld [vmem:[%s899_s25 + $0x60] sm:$0xff] }
  0xb0   : > { %773 = vlog2.f32 %v463_v38  ;;  %v573_v12 = vsel %vm557_vm1, %v506_v49, 0.0  ;;  %v1036_v15 = vadd.s32 %v968_v34, %v529_v37  ;;  %v589_v45 = vsel %vm588_vm4, %v571_v50, 0.0 }
  0xb1   : > { %v766_v42 = vpop.eup %765  ;;  %v406_v7 = vand.u32 2147483647, %v1026_v44  ;;  %v442_v13 = vmul.f32 1.442695, %v417_v9  ;;  %v1045_v25 = vmul.f32 %v357_v16, %v341_v10  ;;  %v575_v63 = vsel %vm559_vm6, %v508_v11, 0.0 }
  0xb2   : > { %v768_v48 = vpop.eup %767  ;;  %v479_v51 = vmul.f32 0.6931472, %v766_v42  ;;  %v592_v46 = vsel %vm588_vm4, %v573_v12, 0.0  ;;  %v340_v43 = vadd.f32 %v921_v35, %v317_v41  ;;  %v596_v4 = vsel %vm588_vm4, %v575_v63, 0.0 }
  0xb3   : > { %v770_v56 = vpop.eup %769  ;;  %v475_v57 = vmul.f32 0.6931472, %v768_v48  ;;  %v422_v19 = vsub.f32 0.0, %v406_v7  ;;  %v405_v42 = vand.u32 2147483647, %v1045_v25  ;;  %v531_v60 = vadd.s32 72, %v957_v22 }
  0xb4   : > { %v772_v0 = vpop.eup %771  ;;  %v507_v1 = vadd.f32 %v479_v51, %v379_v29  ;;  %v462_v5 = vadd.f32 1.0, %v770_v56  ;;  %v1062_v54 = vmul.f32 %v356_v33, %v340_v43  ;;  %v547_v11 = vadd.s32 %v968_v34, %v1019_v36 }
  0xb5   : > { %v505_v58 = vadd.f32 %v475_v57, %v377_v30  ;;  %v483_v17 = vmul.f32 0.6931472, %v772_v0  ;;  %v323_v28 = vpop.xlane.xlu0 %322  ;;  %v383_v30 = vmax.f32 %v962_v27, 0.0  ;;  %v452_v32 = vmul.f32 1.442695, %v422_v19 }
  0xb6   : > { %775 = vlog2.f32 %v462_v5  ;;  %v574_v53 = vsel %vm558_vm5, %v507_v1, 0.0  ;;  %v774_v26 = vpop.eup %773  ;;  %v343_v49 = vadd.f32 %v921_v35, %v323_v28  ;;  %v404_v5 = vand.u32 2147483647, %v1062_v54 }
  0xb7   : > { %v572_v18 = vsel %vm556_vm3, %v505_v58, 0.0  ;;  %777 = vpow2.f32 %v444_v8  ;;  %v509_v29 = vadd.f32 %v483_v17, %v381_v20  ;;  %v594_v38 = vsel %vm588_vm4, %v574_v53, 0.0  ;;  %v359_v20 = vld [vmem:[%s899_s25 + $0x78] sm:$0xff] }
  0xb8   : > { %v590_v21 = vsel %vm588_vm4, %v572_v18, 0.0  ;;  %779 = vpow2.f32 %v446_v52  ;;  %v487_v50 = vmul.f32 0.6931472, %v774_v26  ;;  %v421_v52 = vsub.f32 0.0, %v405_v42 }
  0xb9   : > { %v591_v23 = vadd.f32 %v590_v21, %v589_v45  ;;  %781 = vlog2.f32 %v464_v59  ;;  %v576_v40 = vsel %vm560_vm7, %v509_v29, 0.0  ;;  %v1067_v0 = vmul.f32 %v359_v20, %v343_v49 }
  0xba   : > { %783 = vpow2.f32 %v442_v13  ;;  %v450_v61 = vmul.f32 1.442695, %v421_v52  ;;  %v598_v7 = vsel %vm588_vm4, %v576_v40, 0.0  ;;  %v511_v14 = vadd.f32 %v487_v50, %v383_v30 }
  0xbb   : > { %v593_v6 = vadd.f32 %v592_v46, %v591_v23  ;;  %785 = vpow2.f32 %v452_v32  ;;  %v420_v10 = vsub.f32 0.0, %v404_v5  ;;  %v384_v12 = vmax.f32 %v959_v24, 0.0 }
  0xbc   : > { %v776_v37 = vpop.eup %775  ;;  %vm562_vm9 = vcmp.lt.s32.totalorder %v1036_v15, 300  ;;  %v407_v16 = vand.u32 2147483647, %v1067_v0  ;;  %v532_v18 = vadd.s32 80, %v957_v22  ;;  %v548_v19 = vadd.s32 %v968_v34, %v531_v60 }
  0xbd   : > { %v778_v3 = vpop.eup %777  ;;  %v595_v48 = vadd.f32 %v594_v38, %v593_v6  ;;  %v485_v2 = vmul.f32 0.6931472, %v776_v37  ;;  %v448_v45 = vmul.f32 1.442695, %v420_v10  ;;  %v578_v26 = vsel %vm562_vm9, %v511_v14, 0.0 }
  0xbe   : > { %v780_v27 = vpop.eup %779  ;;  %v466_v51 = vadd.f32 1.0, %v778_v3  ;;  %v423_v13 = vsub.f32 0.0, %v407_v16  ;;  %vm563_vm10 = vcmp.lt.s32.totalorder %v547_v11, 300  ;;  %v533_v47 = vadd.s32 88, %v957_v22 }
  0xbf   : > { %v782_v56 = vpop.eup %781  ;;  %v597_v57 = vadd.f32 %v596_v4, %v595_v48  ;;  %v510_v41 = vadd.f32 %v485_v2, %v382_v62  ;;  %v467_v35 = vadd.f32 1.0, %v780_v27  ;;  %v549_v28 = vadd.s32 %v968_v34, %v532_v18 }
  0xc0   : > { %v784_v59 = vpop.eup %783  ;;  %787 = vlog2.f32 %v466_v51  ;;  %v489_v58 = vmul.f32 0.6931472, %v782_v56  ;;  %v454_v63 = vmul.f32 1.442695, %v423_v13  ;;  %vm564_vm11 = vcmp.lt.s32.totalorder %v548_v19, 300 }
  0xc1   : > { %v465_v1 = vadd.f32 1.0, %v784_v59  ;;  %789 = vpow2.f32 %v450_v61  ;;  %v599_v8 = vadd.f32 %v598_v7, %v597_v57  ;;  %v577_v9 = vsel %vm561_vm8, %v510_v41, 0.0  ;;  %v786_v17 = vpop.eup %785 }
  0xc2   : > { %v600_v21 = vsel %vm588_vm4, %v577_v9, 0.0  ;;  %v512_v23 = vadd.f32 %v489_v58, %v384_v12  ;;  %v470_v15 = vadd.f32 1.0, %v786_v17  ;;  %v602_v6 = vsel %vm588_vm4, %v578_v26, 0.0 }
  0xc3   : > { %791 = vlog2.f32 %v465_v1  ;;  %v601_v36 = vadd.f32 %v600_v21, %v599_v8  ;;  %v385_v30 = vmax.f32 %v1022_v39, 0.0  ;;  %v550_v3 = vadd.s32 %v968_v34, %v533_v47 }
  0xc4   : > { %793 = vlog2.f32 %v467_v35  ;;  %v579_v37 = vsel %vm563_vm10, %v512_v23, 0.0  ;;  %v386_v4 = vmax.f32 %v1015_v31, 0.0  ;;  %v387_v49 = vmax.f32 %v982_v55, 0.0 }
  0xc5   : > { %795 = vpow2.f32 %v448_v45  ;;  %v603_v38 = vadd.f32 %v602_v6, %v601_v36  ;;  %v604_v48 = vsel %vm588_vm4, %v579_v37, 0.0  ;;  %vm565_vm12 = vcmp.lt.s32.totalorder %v549_v28, 300 }
  0xc6   : > { %v788_v53 = vpop.eup %787  ;;  %797 = vpow2.f32 %v454_v63  ;;  %v534_v56 = vadd.s32 96, %v957_v22  ;;  %v535_v40 = vadd.s32 104, %v957_v22  ;;  %vm566_vm13 = vcmp.lt.s32.totalorder %v550_v3, 300 }
  0xc7   : > { %v790_v24 = vpop.eup %789  ;;  %v493_v62 = vmul.f32 0.6931472, %v788_v53  ;;  %v605_v50 = vadd.f32 %v604_v48, %v603_v38  ;;  %v536_v60 = vadd.s32 112, %v957_v22  ;;  %v537_v55 = vadd.s32 120, %v957_v22 }
  0xc8   : > { %v469_v29 = vadd.f32 1.0, %v790_v24  ;;  %v551_v5 = vadd.s32 %v968_v34, %v534_v56  ;;  %v552_v7 = vadd.s32 %v968_v34, %v535_v40  ;;  %v390_v58 = vmax.f32 %v1026_v44, 0.0 }
  0xc9   : > { %v792_v46 = vpop.eup %791  ;;  %v514_v27 = vadd.f32 %v493_v62, %v386_v4  ;;  %v389_v8 = vmax.f32 %v1045_v25, 0.0  ;;  %v388_v12 = vmax.f32 %v1062_v54, 0.0  ;;  %v553_v22 = vadd.s32 %v968_v34, %v536_v60 }
  0xca   : > { %v491_v32 = vmul.f32 0.6931472, %v792_v46  ;;  %v794_v33 = vpop.eup %793  ;;  %799 = vlog2.f32 %v469_v29  ;;  %v554_v18 = vadd.s32 %v968_v34, %v537_v55  ;;  %vm567_vm14 = vcmp.lt.s32.totalorder %v551_v5, 300 }
  0xcb   : > { %801 = vlog2.f32 %v470_v15  ;;  %v796_v43 = vpop.eup %795  ;;  %v495_v2 = vmul.f32 0.6931472, %v794_v33  ;;  %v581_v61 = vsel %vm565_vm12, %v514_v27, 0.0  ;;  %vm568_vm15 = vcmp.lt.s32.totalorder %v552_v7, 300 }
  0xcc   : > { %v513_v42 = vadd.f32 %v491_v32, %v385_v30  ;;  %v468_v39 = vadd.f32 1.0, %v796_v43  ;;  %v798_v51 = vpop.eup %797  ;;  %v608_v11 = vsel %vm588_vm4, %v581_v61, 0.0  ;;  %v391_v13 = vmax.f32 %v1067_v0, 0.0  ;;  %v587_v43 = vld [vmem:[#allocation3] sm:$0x1] }
  0xcd   : > { %v471_v57 = vadd.f32 1.0, %v798_v51  ;;  %v515_v59 = vadd.f32 %v495_v2, %v387_v49  ;;  %vm569_vm0 = vcmp.lt.s32.totalorder %v553_v22, 300  ;;  %vm570_vm1 = vcmp.lt.s32.totalorder %v554_v18, 300 }
  0xce   : > { %v580_v20 = vsel %vm564_vm11, %v513_v42, 0.0  ;;  %803 = vlog2.f32 %v468_v39  ;;  %vm631_vm2 = vcmask 0  }
  0xcf   : > { %v606_v52 = vsel %vm588_vm4, %v580_v20, 0.0  ;;  %805 = vlog2.f32 %v471_v57  ;;  %v582_v10 = vsel %vm566_vm13, %v515_v59, 0.0 }
  0xd0   : > { %v800_v31 = vpop.eup %799  ;;  %v607_v35 = vadd.f32 %v606_v52, %v605_v50  ;;  %v610_v25 = vsel %vm588_vm4, %v582_v10, 0.0 }
  0xd1   : > { %v802_v41 = vpop.eup %801  ;;  %v499_v1 = vmul.f32 0.6931472, %v800_v31 }
  0xd2   : > { %v501_v14 = vmul.f32 0.6931472, %v802_v41  ;;  %v609_v19 = vadd.f32 %v608_v11, %v607_v35 }
  0xd3   : > { %v517_v16 = vadd.f32 %v499_v1, %v389_v8 }
  0xd4   : > { %v804_v9 = vpop.eup %803  ;;  %v518_v44 = vadd.f32 %v501_v14, %v390_v58  ;;  %v611_v26 = vadd.f32 %v610_v25, %v609_v19 }
  0xd5   : > { %v497_v17 = vmul.f32 0.6931472, %v804_v9  ;;  %v806_v45 = vpop.eup %805  ;;  %v584_v54 = vsel %vm568_vm15, %v517_v16, 0.0 }
  0xd6   : > { %v503_v53 = vmul.f32 0.6931472, %v806_v45  ;;  %v585_v34 = vsel %vm569_vm0, %v518_v44, 0.0  ;;  %v614_v46 = vsel %vm588_vm4, %v584_v54, 0.0 }
  0xd7   : > { %v516_v21 = vadd.f32 %v497_v17, %v388_v12  ;;  %v616_v28 = vsel %vm588_vm4, %v585_v34, 0.0 }
  0xd8   : > { %v519_v36 = vadd.f32 %v503_v53, %v391_v13 }
  0xd9   : > { %v583_v23 = vsel %vm567_vm14, %v516_v21, 0.0 }
  0xda   : > { %v612_v24 = vsel %vm588_vm4, %v583_v23, 0.0  ;;  %v586_v63 = vsel %vm570_vm1, %v519_v36, 0.0 }
  0xdb   : > { %v613_v15 = vadd.f32 %v612_v24, %v611_v26  ;;  %v618_v29 = vsel %vm588_vm4, %v586_v63, 0.0 }
  0xdd   : > { %v615_v47 = vadd.f32 %v614_v46, %v613_v15 }
  0xdf   : > { %v617_v0 = vadd.f32 %v616_v28, %v615_v47 }
  0xe1   : > { %v619_v6 = vadd.f32 %v618_v29, %v617_v0 }
  0xe3   : > { %620 = vadd.xlane.f32.xlu1 %v619_v6 }
 0x156   : > { %v621_v30 = vpop.xlane.xlu1 %620 }
 0x157   : > { %v622_v32 = vrot.slane %v621_v30, 4 }
 0x159   : > { %v623_v33 = vadd.f32 %v622_v32, %v621_v30 }
 0x15b   : > { %v624_v37 = vrot.slane %v623_v33, 2 }
 0x15d   : > { %v625_v38 = vadd.f32 %v624_v37, %v623_v33 }
 0x15f   : > { %v626_v62 = vrot.slane %v625_v38, 1 }
 0x161   : > { %v627_v42 = vadd.f32 %v626_v62, %v625_v38 }
 0x163   : > { %722 = vpush %v627_v42 }
 0x194   : > { %s723_s29 = spop %722  ;;  %636 = sbr.rel (%p717_p5) target bundleno = 429 (0x1ad), region = 44 }
 0x195   : > { %v629_v3 = vstv %s723_s29 }
 0x196   : > { %v630_v4 = vadd.f32 %v629_v3, %v587_v43 }
 0x198   : > { %632 = vst.msk [vmem:[#allocation3] sm:$0x1] %vm631_vm2, %v630_v4 }
 0x199   : > { %v850_v48 = vmov 300.0  }
 0x19a   : > { %807 = vrcp.f32 %v850_v48 }
 0x19f   : > { %v637_v27 = vld [vmem:[#allocation3] sm:$0x1] }
 0x1a0   : > { %v808_v2 = vpop.eup %807 }
 0x1a1   : > { %v639_v20 = vmul.f32 300.0, %v808_v2  ;;  %vm643_vm3 = vweird.f32 %v808_v2 }
 0x1a3   : > { %v640_v39 = vsub.f32 1.0, %v639_v20 }
 0x1a5   : > { %v641_v49 = vmul.f32 %v808_v2, %v640_v39 }
 0x1a7   : > { %v642_v50 = vadd.f32 %v808_v2, %v641_v49 }
 0x1a9   : > { %v644_v51 = vsel %vm643_vm3, %v808_v2, %v642_v50 }
 0x1aa   : > { %v645_v52 = vmul.f32 %v644_v51, %v637_v27 }
 0x1ac   : > { %646 = vst.msk [vmem:[#allocation3] sm:$0x1] %vm631_vm2, %v645_v52 }
 0x1ad PF: > { %p728_p6 = scmp.eq.s32.totalorder %s886_s18, 2  ;;  %s851_s30 = smov [#allocation3]  }
 0x1ae   : > { %s653_s5 = sshll.u32 %s851_s30, 4  ;;  %s655_s8 = sshll.u32 %s1121_s4, 4  ;;  %s654_s5 = int_to_ptr.vmem [resolvable:$true] %s653_s5  ;;  %s656_s8 = int_to_ptr.hbm [resolvable:$true] %s655_s8 }
 0x1af   : > { %725 = dma.vmem_to_hbm [thread:$0]  (%p728_p6), %s654_s5, 16, %s656_s8, [#allocation4]  }
 0x1b0   : > { %842 = dma.done.wait (%p728_p6), [#allocation4], 16  }
 0x1b1   : > { %844 = vsyncadd (%p728_p6), [#allocation4], 4294967280 }
 0x1b2 PF: > { %s17_s17 = sadd.s32 1, %s847_s17  }
 0x1b3   : > { %p14_p7 = scmp.ge.s32.totalorder %s17_s17, 5  }
 0x1b5   :  { %16 = sbr.rel (!%p14_p7) target bundleno = 4 (0x4), region = 74 }
 0x1ba   :  { %669 = vsyncpa [#allocation4], 1 }
 0x1bb   :  { %671 = vsyncpa [#allocation4 + $0x1], 1 }

</bundles_post_ra>
